<compile_context>
chip_gen: v5e
topology: v5e:2x2
jax: 0.10.0
libtpu: 0.0.40
codegen_flags: <defaults>
</compile_context>

<pallas_src>
import math

import jax
import jax.numpy as jnp
from jax.experimental import pallas as pl
from jax.experimental.pallas import tpu as pltpu


def _cdiv(a, b):
    return (a + b - 1) // b


def _round_up(x, m):
    return _cdiv(x, m) * m


def _lcm(a, b):
    return a * b // math.gcd(a, b)


# -----------------------------------------------------------------------------
# Kernel 1: UpConvBlock = ConvTranspose3d(k=2, s=2) + LeakyReLU(0.2)
# -----------------------------------------------------------------------------
def _upconv_kernel(x_ref, w_ref, b_ref, o_ref):
    # (TM, G*Cin) @ (G*Cin, G*8*Cout) on the MXU with f32 accumulation,
    # fused bias add + LeakyReLU(0.2); lane-dense store (last dim % 128 == 0).
    acc = jnp.dot(x_ref[...], w_ref[...], preferred_element_type=jnp.float32)
    acc = acc + b_ref[...]
    o_ref[...] = jnp.where(acc >= 0.0, acc, 0.2 * acc).astype(o_ref.dtype)


def upconv_block(x_ncdhw, weight, bias, *, tile_voxels=8192,
                 compute_dtype=jnp.bfloat16, out_dtype=None):
    """ConvTranspose3d(kernel=2, stride=2) + LeakyReLU(0.2).

    x_ncdhw: (N, Cin, D, H, W)     -- PyTorch NCDHW input
    weight:  (Cin, Cout, 2, 2, 2)  -- PyTorch ConvTranspose3d weight layout
    bias:    (Cout,)
    returns: (N, Cout, 2D, 2H, 2W) -- NCDHW output
    """
    N, Cin, D, H, W = x_ncdhw.shape
    Cout = weight.shape[1]
    out_dtype = x_ncdhw.dtype if out_dtype is None else out_dtype

    # ---- layout glue (channels-last voxel rows) --------------------------------
    x = jnp.transpose(x_ncdhw, (0, 2, 3, 4, 1)).reshape(N * D * H * W, Cin)
    # Weight matrix columns ordered (kd, kh, kw, cout) -> (Cin, 8*Cout).
    w_mat = jnp.transpose(weight, (0, 2, 3, 4, 1)).reshape(Cin, 8 * Cout)

    # ---- voxel-group packing ---------------------------------------------------
    # Pack G consecutive voxels per matmul row (a pure reshape -- identical HBM
    # layout) so that G*Cin and G*8*Cout are both multiples of 128 lanes.
    G = _lcm(128 // math.gcd(Cin, 128), 128 // math.gcd(8 * Cout, 128))
    k_dim = G * Cin
    cols = G * 8 * Cout

    M = N * D * H * W
    rows = _cdiv(M, G)

    # Tile sizing: ~tile_voxels voxels per grid step (amortizes ~0.35us/step),
    # >= 2 grid steps when possible so "parallel" shards across 2 TCs (v7x).
    req = max(8, _round_up(max(tile_voxels // G, 1), 8))
    if rows >= 16:
        cap = max(8, _round_up(_cdiv(rows, 2), 8))
    else:
        cap = _round_up(rows, 8)
    tile_rows = min(req, cap)
    rows_pad = _round_up(rows, tile_rows)
    m_pad = rows_pad * G

    if m_pad != M:
        x = jnp.pad(x, ((0, m_pad - M), (0, 0)))
    x_packed = x.reshape(rows_pad, k_dim).astype(compute_dtype)

    # Block-diagonal weight: row-group g only touches voxel g's channels/outputs.
    w_big = jnp.kron(jnp.eye(G, dtype=w_mat.dtype), w_mat).astype(compute_dtype)
    # Bias replicated per kernel position and per packed voxel (f32 add in-kernel).
    b_big = jnp.tile(bias.astype(jnp.float32), 8 * G).reshape(1, cols)

    # Explicit VMEM budget (double-buffered x/out tiles + resident weight/bias).
    in_item = jnp.dtype(compute_dtype).itemsize
    out_item = jnp.dtype(out_dtype).itemsize
    vmem_est = (2 * tile_rows * k_dim * in_item
                + 2 * tile_rows * cols * out_item
                + k_dim * cols * in_item
                + cols * 4)
    vmem_limit = int(min(max(2 * vmem_est, 16 * 1024 * 1024), 48 * 1024 * 1024))

    out_packed = pl.pallas_call(
        _upconv_kernel,
        out_shape=jax.ShapeDtypeStruct((rows_pad, cols), out_dtype),
        grid_spec=pltpu.PrefetchScalarGridSpec(
            num_scalar_prefetch=0,
            grid=(rows_pad // tile_rows,),
            in_specs=[
                pl.BlockSpec((tile_rows, k_dim), lambda i: (i, 0)),
                pl.BlockSpec((k_dim, cols), lambda i: (0, 0)),
                pl.BlockSpec((1, cols), lambda i: (0, 0)),
            ],
            out_specs=pl.BlockSpec((tile_rows, cols), lambda i: (i, 0)),
        ),
        compiler_params=pltpu.CompilerParams(
            dimension_semantics=("parallel",),
            vmem_limit_bytes=vmem_limit),
    )(x_packed, w_big, b_big)

    # Unpack: (rows_pad, G*8*Cout) -> (M, 8*Cout) is a free reshape.
    out_flat = out_packed.reshape(m_pad, 8 * Cout)[:M]
    # Single fused permutation: (N,D,H,W,kd,kh,kw,Cout) -> (N,Cout,D,kd,H,kh,W,kw)
    # -> (N, Cout, 2D, 2H, 2W).
    out = out_flat.reshape(N, D, H, W, 2, 2, 2, Cout)
    out = jnp.transpose(out, (0, 7, 1, 4, 2, 5, 3, 6))
    return out.reshape(N, Cout, 2 * D, 2 * H, 2 * W)


# -----------------------------------------------------------------------------
# Kernel 2: ConvBlock = Conv3d(kernel=1) + InstanceNorm3d(eps=1e-6) + LeakyReLU(0.2)
# -----------------------------------------------------------------------------
def _make_convblock_kernel(eps, negative_slope):
    def _kernel(x_ref, w_ref, b_ref, o_ref):
        # x_ref: (1, Cin, V), w_ref: (Cout, Cin), b_ref: (Cout, 1), o_ref: (1, Cout, V)
        y = jnp.dot(w_ref[...], x_ref[0],
                    preferred_element_type=jnp.float32) + b_ref[...]
        # InstanceNorm over the voxel (lane) axis, per (n, c).
        mean = jnp.mean(y, axis=1, keepdims=True)
        var = jnp.mean(jnp.square(y - mean), axis=1, keepdims=True)
        yn = (y - mean) * jax.lax.rsqrt(var + eps)
        o_ref[0] = jnp.where(yn >= 0.0, yn, negative_slope * yn).astype(o_ref.dtype)
    return _kernel


def conv_in_lrelu_block(x_ncdhw, weight, bias, *, eps=1e-6, negative_slope=0.2):
    """Conv3d(kernel=1) + InstanceNorm3d(eps, affine=False) + LeakyReLU.

    x_ncdhw: (N, Cin, D, H, W)             -- PyTorch NCDHW input
    weight:  (Cout, Cin) or (Cout, Cin, 1, 1, 1)
    bias:    (Cout,)
    returns: (N, Cout, D, H, W) float32
    """
    N, Cin, D, H, W = x_ncdhw.shape
    w2 = weight.reshape(weight.shape[0], Cin).astype(jnp.float32)
    Cout = w2.shape[0]
    V = D * H * W

    # Native NCDHW layout: channels on sublanes, voxels on lanes (lane-dense when
    # V % 128 == 0).  No transposes needed on either side.
    x = x_ncdhw.reshape(N, Cin, V).astype(jnp.float32)
    b2 = bias.reshape(Cout, 1).astype(jnp.float32)

    # TODO(synk): for volumes too large for one VMEM-resident (Cin, V) slab, tile V
    # on a second grid axis with a two-pass (stats, normalize) pipeline.
    out = pl.pallas_call(
        _make_convblock_kernel(float(eps), float(negative_slope)),
        out_shape=jax.ShapeDtypeStruct((N, Cout, V), jnp.float32),
        grid_spec=pltpu.PrefetchScalarGridSpec(
            num_scalar_prefetch=0,
            grid=(N,),
            in_specs=[
                pl.BlockSpec((1, Cin, V), lambda n: (n, 0, 0)),
                pl.BlockSpec((Cout, Cin), lambda n: (0, 0)),
                pl.BlockSpec((Cout, 1), lambda n: (0, 0)),
            ],
            out_specs=pl.BlockSpec((1, Cout, V), lambda n: (n, 0, 0)),
        ),
        compiler_params=pltpu.CompilerParams(
            dimension_semantics=("parallel",),
            vmem_limit_bytes=64 * 1024 * 1024),
    )(x, w2, b2)
    return out.reshape(N, Cout, D, H, W)


# -----------------------------------------------------------------------------
# Pure-JAX references
# -----------------------------------------------------------------------------
def _reference_upconv(x_ncdhw, weight, bias):
    """Independent pure-JAX reference (strided scatter formulation)."""
    N, Cin, D, H, W = x_ncdhw.shape
    Cout = weight.shape[1]
    out = jnp.zeros((N, Cout, 2 * D, 2 * H, 2 * W), jnp.float32)
    for kd in range(2):
        for kh in range(2):
            for kw in range(2):
                contrib = jnp.einsum(
                    'ncdhw,co->nodhw', x_ncdhw, weight[:, :, kd, kh, kw])
                out = out.at[:, :, kd::2, kh::2, kw::2].set(contrib)
    out = out + bias[None, :, None, None, None]
    return jnp.where(out >= 0.0, out, 0.2 * out)


def _reference_convblock(x_ncdhw, weight, bias, eps=1e-6):
    w2 = weight.reshape(weight.shape[0], x_ncdhw.shape[1])
    y = jnp.einsum('ncdhw,oc->nodhw', x_ncdhw, w2)
    y = y + bias[None, :, None, None, None]
    mean = y.mean(axis=(2, 3, 4), keepdims=True)
    var = ((y - mean) ** 2).mean(axis=(2, 3, 4), keepdims=True)
    yn = (y - mean) / jnp.sqrt(var + eps)
    return jnp.where(yn >= 0.0, yn, 0.2 * yn)


if __name__ == "__main__":
    key = jax.random.PRNGKey(0)

    def make_upconv_params(k, cin, cout):
        kw_, kb_ = jax.random.split(k)
        fan_in, fan_out = cin * 8, cout * 8
        bound = math.sqrt(6.0 / (fan_in + fan_out))
        w = jax.random.uniform(kw_, (cin, cout, 2, 2, 2), jnp.float32,
                               minval=-bound, maxval=bound)
        bb = 1.0 / math.sqrt(fan_in)
        b = jax.random.uniform(kb_, (cout,), jnp.float32, minval=-bb, maxval=bb)
        return w, b

    def make_conv_params(k, cin, cout):
        kw_, kb_ = jax.random.split(k)
        bound = math.sqrt(6.0 / (cin + cout))
        w = jax.random.uniform(kw_, (cout, cin, 1, 1, 1), jnp.float32,
                               minval=-bound, maxval=bound)
        bb = 1.0 / math.sqrt(cin)
        b = jax.random.uniform(kb_, (cout,), jnp.float32, minval=-bb, maxval=bb)
        return w, b

    k1, k2, k3, k4, k5, k6, k7, k8 = jax.random.split(key, 8)

    # ---- UpConvBlock, Config A: LocalizationNet(k=4) decoder stage 1 -> (16 -> 8).
    N, Cin, Cout, D, H, W = 2, 16, 8, 8, 8, 8
    wA, bA = make_upconv_params(k1, Cin, Cout)
    xA = jax.random.normal(k2, (N, Cin, D, H, W), jnp.float32)

    outA_bf16 = jax.block_until_ready(upconv_block(xA, wA, bA))
    outA_f32 = jax.block_until_ready(
        upconv_block(xA, wA, bA, compute_dtype=jnp.float32))
    refA = _reference_upconv(xA, wA, bA)
    assert outA_bf16.shape == (N, Cout, 2 * D, 2 * H, 2 * W), outA_bf16.shape
    assert jnp.allclose(outA_f32, refA, atol=1e-4, rtol=1e-4), "f32 mismatch (A)"
    assert jnp.allclose(outA_bf16, refA, atol=5e-2, rtol=5e-2), "bf16 mismatch (A)"

    # ---- UpConvBlock, Config B: decoder stage 3 -> (4 -> 4); odd spatial size to
    # exercise the row-padding path and a different packing factor G.
    N2, Cin2, Cout2, D2, H2, W2 = 1, 4, 4, 5, 5, 5
    wB, bB = make_upconv_params(k3, Cin2, Cout2)
    xB = jax.random.normal(k4, (N2, Cin2, D2, H2, W2), jnp.float32)
    outB = jax.block_until_ready(
        upconv_block(xB, wB, bB, compute_dtype=jnp.float32))
    refB = _reference_upconv(xB, wB, bB)
    assert outB.shape == (N2, Cout2, 2 * D2, 2 * H2, 2 * W2), outB.shape
    assert jnp.allclose(outB, refB, atol=1e-4, rtol=1e-4), "f32 mismatch (B)"

    # ---- ConvBlock, Config C: `base` layer (16 -> 16) at bottleneck resolution.
    N3, Cin3, Cout3, S3 = 2, 16, 16, 2
    wC, bC = make_conv_params(k5, Cin3, Cout3)
    xC = jax.random.normal(k6, (N3, Cin3, S3, S3, S3), jnp.float32)
    outC = jax.block_until_ready(conv_in_lrelu_block(xC, wC, bC))
    refC = _reference_convblock(xC, wC, bC)
    assert outC.shape == refC.shape, outC.shape
    assert jnp.allclose(outC, refC, atol=1e-3, rtol=1e-3), "convblock mismatch (C)"

    # ---- ConvBlock, Config D: `conv_dec_3` (8 -> 4) at full 16^3 resolution
    # (V = 4096 voxels -> lane-dense loads/stores).
    N4, Cin4, Cout4, S4 = 2, 8, 4, 16
    wD, bD = make_conv_params(k7, Cin4, Cout4)
    xD = jax.random.normal(k8, (N4, Cin4, S4, S4, S4), jnp.float32)
    outD = jax.block_until_ready(conv_in_lrelu_block(xD, wD, bD))
    refD = _reference_convblock(xD, wD, bD)
    assert outD.shape == refD.shape, outD.shape
    assert jnp.allclose(outD, refD, atol=1e-3, rtol=1e-3), "convblock mismatch (D)"

    print("KERNEL_OK")
</pallas_src>

<mosaic_0001>
module attributes {stable_mosaic.version = 11 : i64} {
  func.func @_upconv_kernel(%arg0: i32, %arg1: memref<64x128xbf16, #tpu.memory_space<vmem>>, %arg2: memref<128x512xbf16, #tpu.memory_space<vmem>>, %arg3: memref<1x512xf32, #tpu.memory_space<vmem>>, %arg4: memref<64x512xf32, #tpu.memory_space<vmem>>) attributes {dimension_semantics = [#tpu.dimension_semantics<parallel>], iteration_bounds = array<i64: 2>, scalar_prefetch = 0 : i64, scratch_operands = 0 : i64, tpu.core_type = #tpu.core_type<tc>, window_params = [{transform_indices = @transform_0, window_bounds = array<i64: 64, 128>}, {pipeline_mode = #tpu.pipeline_mode<synchronous>, transform_indices = @transform_1, window_bounds = array<i64: 128, 512>}, {pipeline_mode = #tpu.pipeline_mode<synchronous>, transform_indices = @transform_2, window_bounds = array<i64: 1, 512>}, {transform_indices = @transform_3, window_bounds = array<i64: 64, 512>}]} {
    %c0 = arith.constant 0 : index
    %c0_0 = arith.constant 0 : index
    %0 = vector.load %arg1[%c0, %c0_0] : memref<64x128xbf16, #tpu.memory_space<vmem>>, vector<64x128xbf16>
    %c0_1 = arith.constant 0 : index
    %c0_2 = arith.constant 0 : index
    %1 = vector.load %arg2[%c0_1, %c0_2] : memref<128x512xbf16, #tpu.memory_space<vmem>>, vector<128x512xbf16>
    %cst = arith.constant dense<0.000000e+00> : vector<64x512xf32>
    %2 = tpu.matmul %0, %1, %cst {dimension_numbers = #tpu.dot_dimension_numbers<[1], [0], [0], [1], [0, 0, 1, 1], [], []>} : vector<64x128xbf16>, vector<128x512xbf16>, vector<64x512xf32> -> vector<64x512xf32>
    %c0_3 = arith.constant 0 : index
    %c0_4 = arith.constant 0 : index
    %3 = vector.load %arg3[%c0_3, %c0_4] : memref<1x512xf32, #tpu.memory_space<vmem>>, vector<1x512xf32>
    %4 = vector.broadcast %3 : vector<1x512xf32> to vector<64x512xf32>
    %5 = arith.addf %2, %4 : vector<64x512xf32>
    %cst_5 = arith.constant 0.000000e+00 : f32
    %6 = vector.broadcast %cst_5 : f32 to vector<64x512xf32>
    %7 = arith.cmpf oge, %5, %6 : vector<64x512xf32>
    %cst_6 = arith.constant 2.000000e-01 : f32
    %8 = vector.broadcast %cst_6 : f32 to vector<64x512xf32>
    %9 = arith.mulf %8, %5 : vector<64x512xf32>
    %10 = arith.select %7, %5, %9 : vector<64x512xi1>, vector<64x512xf32>
    %c0_7 = arith.constant 0 : index
    %c0_8 = arith.constant 0 : index
    %11 = vector.load %arg4[%c0_7, %c0_8] : memref<64x512xf32, #tpu.memory_space<vmem>>, vector<64x512xf32>
    tpu.vector_store %arg4[%c0_7, %c0_8], %10 {strides = array<i32>} : memref<64x512xf32, #tpu.memory_space<vmem>>, vector<64x512xf32>,
    return
  }
  func.func @transform_0(%arg0: i32) -> (i32, i32) {
    %c0_i32 = arith.constant 0 : i32
    %c0_i32_0 = arith.constant 0 : i32
    return %arg0, %c0_i32 : i32, i32
  }
  func.func @transform_1(%arg0: i32) -> (i32, i32) {
    %c0_i32 = arith.constant 0 : i32
    %c0_i32_0 = arith.constant 0 : i32
    %c0_i32_1 = arith.constant 0 : i32
    return %c0_i32, %c0_i32_0 : i32, i32
  }
  func.func @transform_2(%arg0: i32) -> (i32, i32) {
    %c0_i32 = arith.constant 0 : i32
    %c0_i32_0 = arith.constant 0 : i32
    %c0_i32_1 = arith.constant 0 : i32
    return %c0_i32, %c0_i32_0 : i32, i32
  }
  func.func @transform_3(%arg0: i32) -> (i32, i32) {
    %c0_i32 = arith.constant 0 : i32
    %c0_i32_0 = arith.constant 0 : i32
    return %arg0, %c0_i32 : i32, i32
  }
}

</mosaic_0001>

<bundles_post_ra>
// kernel: tpu_custom_call.1
= control target key start
LH: loop header
LB: loop body
LE: loop exit
PB: predicated region body
PF: predicated region fallthrough
CT: control target
= control target key end

     0   :  { %8 = vsyncpa [#allocation3], 0  ;;  %s1499_s0 = inlined_call_operand.hbm [shape: bf16[128,128], index: 0, kind: input, shape index: {}]   ;;  %s1500_s1 = inlined_call_operand.hbm [shape: bf16[128,512], index: 1, kind: input, shape index: {}]   ;;  %s1501_s2 = inlined_call_operand.hbm [shape: f32[1,512], index: 2, kind: input, shape index: {}]   ;;  %s1502_s3 = inlined_call_operand.hbm [shape: f32[128,512], index: 3, kind: output, shape index: {}]  }
   0x1   :  { %10 = vsyncpa [#allocation3 + $0x1], 0 }
   0x2   :  { %11 = vsyncpa [#allocation6], 0 }
   0x3   :  { %12 = vsyncpa [#allocation4], 0 }
   0x4   :  { %14 = vsyncpa [#allocation4 + $0x1], 0  ;;  %s1276_s12 = smov 0   ;;  %s1278_s13 = smov 0  }
   0x5   :  { %s1280_s14 = smov 0   ;;  %s1282_s15 = smov 0  }
   0x6 LB: > { %s1297_s16 = sadd.s32 4294967295, %s1246_s15   ;;  %s811_s17 = sadd.s32 4294967294, %s1246_s15   ;;  %s1246_s15 = sphi %s1282_s15, %s1512_s15   ;;  %s1242_s14 = sphi %s1280_s14, %s1511_s14   ;;  %s1238_s13 = sphi %s1278_s13, %s1510_s13   ;;  %s1234_s12 = sphi %s1276_s12, %s1509_s12  }
   0x7   : > { %p40_p0 = scmp.ne.s32.totalorder %s1238_s13, %s1234_s12  ;;  %p41_p1 = scmp.eq.s32.totalorder %s1297_s16, 0 }
   0x8   : > { %p106_p2 = scmp.eq.s32.totalorder %s1297_s16, 1  ;;  %p112_p3 = scmp.eq.s32.totalorder %s811_s17, 1 }
   0x9   : > { %p1306_p4 = por %p41_p1, %p40_p0  ;;  %p812_p5 = scmp.ge.s32.totalorder %s1246_s15, 1 }
   0xa   : > { %p1311_p6 = por %p112_p3, %p40_p0  ;;  %p119_p7 = scmp.lt.s32.totalorder %s1246_s15, 3 }
   0xb   : > { %s130_s22 = sshll.u32 %s1500_s1, 4  ;;  %s1248_s24 = smov [#allocation5]   ;;  %s131_s22 = int_to_ptr.hbm [resolvable:$true] %s130_s22 }
   0xc   : > { %p1319_p8 = pnand %p812_p5, %p119_p7  ;;  %s132_s25 = sshll.u32 %s1248_s24, 4  ;;  %s133_s25 = int_to_ptr.vmem [resolvable:$true] %s132_s25 }
   0xd   : > { %s145_s28 = sshll.u32 %s1501_s2, 4  ;;  %s1249_s29 = smov 256   ;;  %s146_s28 = int_to_ptr.hbm [resolvable:$true] %s145_s28 }
   0xe   : > { %p1025_p9 = pneg %p1319_p8  ;;  %s1250_s30 = smov 16  }
   0xf   : > { %s1251_s4 = smov [#allocation7]   ;;  %s1332_s6 = sadd.s32 1, %s1246_s15  }
  0x10   : > { %p1026_p10 = pnand %p1025_p9, %p41_p1  ;;  %s147_s5 = sshll.u32 %s1251_s4, 4  ;;  %s148_s5 = int_to_ptr.vmem [resolvable:$true] %s147_s5 }
  0x11   : > { %s27_s7 = sadd.s32 1, %s1242_s14  ;;  %s24_s8 = ssub.s32 %s1246_s15, %s1332_s6 }
  0x12   : > { %1028 = dma.hbm_to_vmem [thread:$0]  (!%p1026_p10), %s131_s22, 4096, %s133_s25, [#allocation6], %s1249_s29, %s1249_s29, %s1250_s30  }
  0x13   : > { %1031 = dma.hbm_to_vmem [thread:$0]  (!%p1026_p10), %s146_s28, 64, %s148_s5, [#allocation6]  }
  0x14   : > { %p34_p12 = scmp.ne.s32.totalorder %s1242_s14, %s1238_s13  ;;  %p25_p13 = scmp.eq.s32.totalorder %s24_s8, 0 }
  0x15   : > { %p35_p0 = scmp.eq.s32.totalorder %s1246_s15, 0  ;;  %p1042_p5 = scmp.lt.s32.totalorder %s1246_s15, 2 }
  0x16   : > { %p1342_p3 = por %p106_p2, %p34_p12  ;;  %s158_s11 = sand.u32 1, %s1242_s14  }
  0x17   : > { %s1348_s10 = scalar_select %p25_p13, %s1242_s14, %s27_s7  }
  0x18   : > { %p36_p7 = por %p35_p0, %p34_p12  ;;  %s816_s17 = sshll.u32 %s158_s11, 5 }
  0x19   : > { %s974_s20 = sshll.u32 %s1246_s15, 5  ;;  %s162_s25 = scalar_lea.vmem [#allocation2], %s816_s17 }
  0x1a   : > { %s167_s24 = scalar_lea.hbm %s1499_s0, %s974_s20  ;;  %s170_s26 = sshll.u32 %s162_s25, 4  ;;  %s171_s26 = int_to_ptr.vmem [resolvable:$true] %s170_s26 }
  0x1b   : > { %s168_s27 = sshll.u32 %s167_s24, 4  ;;  %p1355_p2 = pnand %p1042_p5, %p36_p7  ;;  %s169_s27 = int_to_ptr.hbm [resolvable:$true] %s168_s27 }
  0x1c   : > { %s159_s29 = scalar_lea.sflag [#allocation3], %s158_s11  ;;  %s1146_s30 = sshra.s32 %s169_s27, 4  ;;  %s1147_s30 = int_to_ptr.hbm [resolvable:$true] %s1146_s30 }
  0x1d   : > { %s1148_s4 = scalar_lea.hbm %s1147_s30, 32  ;;  %p1150_p10 = pneg %p1355_p2 }
  0x1e   : > { %p1149_p9 = scmp.ne.s32.totalorder %s1147_s30, %s1148_s4  ;;  %s1153_s8 = scalar_lea.hbm %s1499_s0, 64 }
  0x1f   : > { %p1154_p0 = scmp.lt.s32.totalorder %s1147_s30, %s1499_s0  ;;  %p1155_p5 = scmp.lt.s32.totalorder %s1153_s8, %s1148_s4 }
  0x20   : > { %p1151_p12 = pnand %p1150_p10, %p1149_p9 }
  0x21   : > { %p1156_p7 = por %p1155_p5, %p1154_p0 }
  0x22   : > { %p1152_p13 = pneg %p1151_p12 }
  0x24   : > { %p1157_p11 = pnand %p1156_p7, %p1152_p13 }
  0x26   : > { %1160 = shalt.err (!%p1157_p11)
}
  0x27   : > { %s1252_s11 = smov 64   ;;  %s1253_s21 = smov 4  }
  0x28   : > { %1035 = dma.hbm_to_vmem [thread:$0]  (!%p1355_p2), %s169_s27, 512, %s171_s26, %s159_s29, %s1252_s11, %s1252_s11, %s1253_s21  }
  0x29   : > { %182 = sbr.rel (%p1319_p8) target bundleno = 283 (0x11b), region = 32  ;;  %s1372_s22 = sand.u32 (!%p1319_p8), 1, %s1238_s13  }
  0x2a   : > { %s820_s24 = sshll.u32 (!%p1319_p8), %s1372_s22, 5  ;;  %s185_s25 = scalar_lea.sflag (!%p1319_p8), [#allocation3], %s1372_s22 }
  0x2b   : > { %s1376_s30 = scalar_lea.vmem (!%p1319_p8), [#allocation2], %s820_s24 }
  0x2e   : > { %1221 = dma.done.wait (%p1306_p4), %s185_s25, 512  }
  0x2f   : > { %1223 = vsyncadd (%p1306_p4), %s185_s25, 4294966784 }
  0x30   : > { %1225 = dma.done.wait (%p41_p1), [#allocation6], 4160  }
  0x31   : > { %1227 = vsyncadd (%p41_p1), [#allocation6], 4294963136  ;;  %v954_v0 = vld [vmem:[#allocation5 + $0xe0] sm:$0xf]  ;;  %v1009_v1 = vld [vmem:[#allocation5 + $0xec] sm:$0xf0] }
  0x32   : > { %v1007_v2 = vld [vmem:[#allocation5 + $0xe4] sm:$0xf]  ;;  %v955_v3 = vor.u32 %v1009_v1, %v954_v0  ;;  %v956_v4 = vld [vmem:[#allocation5 + $0xf0] sm:$0xf0]  ;;  %v962_v5 = vld [vmem:[#allocation5 + $0xe8] sm:$0xf] }
  0x33   : > { %v1010_v6 = vld [vmem:[#allocation5 + $0xf4] sm:$0xf0]  ;;  %v959_v7 = vor.u32 %v1007_v2, %v956_v4  ;;  %v1008_v9 = vld [vmem:[#allocation5 + $0xec] sm:$0xf]  ;;  %v964_v10 = vld [vmem:[#allocation5 + $0xf8] sm:$0xf0] }
  0x34   : > { %v963_v8 = vor.u32 %v1010_v6, %v962_v5  ;;  %v938_v11 = vld [vmem:[#allocation5 + $0xc0] sm:$0xf]  ;;  %458 = vmatpush.bf16.msra.mxu0 %v955_v3  ;;  %v967_v12 = vor.u32 %v1008_v9, %v964_v10  ;;  %v1005_v13 = vld [vmem:[#allocation5 + $0xcc] sm:$0xf0]  ;;  %v1003_v14 = vld [vmem:[#allocation5 + $0xc4] sm:$0xf] }
  0x35   : > { %v940_v15 = vld [vmem:[#allocation5 + $0xd0] sm:$0xf0]  ;;  %487 = vmatpush.bf16.msra.mxu1 %v959_v7  ;;  %v939_v16 = vor.u32 %v1005_v13, %v938_v11  ;;  %v946_v18 = vld [vmem:[#allocation5 + $0xc8] sm:$0xf]  ;;  %v1006_v19 = vld [vmem:[#allocation5 + $0xd4] sm:$0xf0] }
  0x36   : > { %516 = vmatpush.bf16.msra.mxu2 %v963_v8  ;;  %v943_v17 = vor.u32 %v1003_v14, %v940_v15  ;;  %v1004_v20 = vld [vmem:[#allocation5 + $0xcc] sm:$0xf]  ;;  %545 = vmatpush.bf16.msra.mxu3 %v967_v12  ;;  %v947_v21 = vor.u32 %v1006_v19, %v946_v18  ;;  %v948_v22 = vld [vmem:[#allocation5 + $0xd8] sm:$0xf0]  ;;  %v922_v23 = vld [vmem:[#allocation5 + $0xa0] sm:$0xf] }
  0x37   : > { %v1001_v24 = vld [vmem:[#allocation5 + $0xac] sm:$0xf0]  ;;  %v951_v25 = vor.u32 %v1004_v20, %v948_v22  ;;  %v999_v26 = vld [vmem:[#allocation5 + $0xa4] sm:$0xf]  ;;  %v924_v27 = vld [vmem:[#allocation5 + $0xb0] sm:$0xf0] }
  0x38   : > { %v930_v28 = vld [vmem:[#allocation5 + $0xa8] sm:$0xf]  ;;  %459 = vmatpush.bf16.msra.mxu0 %v939_v16  ;;  %v923_v29 = vor.u32 %v1001_v24, %v922_v23  ;;  %v1002_v30 = vld [vmem:[#allocation5 + $0xb4] sm:$0xf0]  ;;  %v1000_v31 = vld [vmem:[#allocation5 + $0xac] sm:$0xf]  ;;  %v927_v33 = vor.u32 %v999_v26, %v924_v27 }
  0x39   : > { %v932_v32 = vld [vmem:[#allocation5 + $0xb8] sm:$0xf0]  ;;  %488 = vmatpush.bf16.msra.mxu1 %v943_v17  ;;  %v931_v34 = vor.u32 %v1002_v30, %v930_v28  ;;  %v906_v35 = vld [vmem:[#allocation5 + $0x80] sm:$0xf]  ;;  %v997_v36 = vld [vmem:[#allocation5 + $0x8c] sm:$0xf0] }
  0x3a   : > { %517 = vmatpush.bf16.msra.mxu2 %v947_v21  ;;  %v995_v37 = vld [vmem:[#allocation5 + $0x84] sm:$0xf]  ;;  %546 = vmatpush.bf16.msra.mxu3 %v951_v25  ;;  %v935_v38 = vor.u32 %v1000_v31, %v932_v32  ;;  %v908_v39 = vld [vmem:[#allocation5 + $0x90] sm:$0xf0]  ;;  %v914_v40 = vld [vmem:[#allocation5 + $0x88] sm:$0xf]  ;;  %v907_v44 = vor.u32 %v997_v36, %v906_v35 }
  0x3b   : > { %v998_v41 = vld [vmem:[#allocation5 + $0x94] sm:$0xf0]  ;;  %v996_v42 = vld [vmem:[#allocation5 + $0x8c] sm:$0xf]  ;;  %v916_v43 = vld [vmem:[#allocation5 + $0x98] sm:$0xf0]  ;;  %v911_v45 = vor.u32 %v995_v37, %v908_v39 }
  0x3c   : > { %460 = vmatpush.bf16.msra.mxu0 %v923_v29  ;;  %v915_v46 = vor.u32 %v998_v41, %v914_v40  ;;  %v890_v47 = vld [vmem:[#allocation5 + $0x60] sm:$0xf]  ;;  %v993_v48 = vld [vmem:[#allocation5 + $0x6c] sm:$0xf0]  ;;  %v991_v49 = vld [vmem:[#allocation5 + $0x64] sm:$0xf]  ;;  %v919_v50 = vor.u32 %v996_v42, %v916_v43 }
  0x3d   : > { %489 = vmatpush.bf16.msra.mxu1 %v927_v33  ;;  %v892_v51 = vld [vmem:[#allocation5 + $0x70] sm:$0xf0]  ;;  %v898_v52 = vld [vmem:[#allocation5 + $0x68] sm:$0xf]  ;;  %v994_v53 = vld [vmem:[#allocation5 + $0x74] sm:$0xf0]  ;;  %v891_v56 = vor.u32 %v993_v48, %v890_v47 }
  0x3e   : > { %518 = vmatpush.bf16.msra.mxu2 %v931_v34  ;;  %547 = vmatpush.bf16.msra.mxu3 %v935_v38  ;;  %v992_v54 = vld [vmem:[#allocation5 + $0x6c] sm:$0xf]  ;;  %v900_v55 = vld [vmem:[#allocation5 + $0x78] sm:$0xf0]  ;;  %v895_v57 = vor.u32 %v991_v49, %v892_v51  ;;  %v899_v58 = vor.u32 %v994_v53, %v898_v52  ;;  %v874_v59 = vld [vmem:[#allocation5 + $0x40] sm:$0xf] }
  0x3f   : > { %v989_v60 = vld [vmem:[#allocation5 + $0x4c] sm:$0xf0]  ;;  %v987_v61 = vld [vmem:[#allocation5 + $0x44] sm:$0xf]  ;;  %v903_v62 = vor.u32 %v992_v54, %v900_v55  ;;  %v876_v63 = vld [vmem:[#allocation5 + $0x50] sm:$0xf0] }
  0x40   : > { %461 = vmatpush.bf16.msra.mxu0 %v907_v44  ;;  %v882_v0 = vld [vmem:[#allocation5 + $0x48] sm:$0xf]  ;;  %v990_v1 = vld [vmem:[#allocation5 + $0x54] sm:$0xf0]  ;;  %v988_v2 = vld [vmem:[#allocation5 + $0x4c] sm:$0xf]  ;;  %v875_v4 = vor.u32 %v989_v60, %v874_v59  ;;  %v879_v5 = vor.u32 %v987_v61, %v876_v63 }
  0x41   : > { %490 = vmatpush.bf16.msra.mxu1 %v911_v45  ;;  %v884_v3 = vld [vmem:[#allocation5 + $0x58] sm:$0xf0]  ;;  %v883_v6 = vor.u32 %v990_v1, %v882_v0  ;;  %v858_v7 = vld [vmem:[#allocation5 + $0x20] sm:$0xf]  ;;  %v985_v8 = vld [vmem:[#allocation5 + $0x2c] sm:$0xf0] }
  0x42   : > { %519 = vmatpush.bf16.msra.mxu2 %v915_v46  ;;  %548 = vmatpush.bf16.msra.mxu3 %v919_v50  ;;  %v983_v9 = vld [vmem:[#allocation5 + $0x24] sm:$0xf]  ;;  %v887_v10 = vor.u32 %v988_v2, %v884_v3  ;;  %v860_v11 = vld [vmem:[#allocation5 + $0x30] sm:$0xf0]  ;;  %v866_v12 = vld [vmem:[#allocation5 + $0x28] sm:$0xf]  ;;  %v859_v16 = vor.u32 %v985_v8, %v858_v7 }
  0x43   : > { %v986_v13 = vld [vmem:[#allocation5 + $0x34] sm:$0xf0]  ;;  %v984_v14 = vld [vmem:[#allocation5 + $0x2c] sm:$0xf]  ;;  %v868_v15 = vld [vmem:[#allocation5 + $0x38] sm:$0xf0]  ;;  %v863_v17 = vor.u32 %v983_v9, %v860_v11 }
  0x44   : > { %462 = vmatpush.bf16.msra.mxu0 %v891_v56  ;;  %v867_v18 = vor.u32 %v986_v13, %v866_v12  ;;  %v842_v19 = vld [vmem:[#allocation5] sm:$0xf]  ;;  %v981_v20 = vld [vmem:[#allocation5 + $0xc] sm:$0xf0]  ;;  %v979_v21 = vld [vmem:[#allocation5 + $0x4] sm:$0xf]  ;;  %v871_v22 = vor.u32 %v984_v14, %v868_v15 }
  0x45   : > { %491 = vmatpush.bf16.msra.mxu1 %v895_v57  ;;  %v844_v23 = vld [vmem:[#allocation5 + $0x10] sm:$0xf0]  ;;  %v850_v24 = vld [vmem:[#allocation5 + $0x8] sm:$0xf]  ;;  %v982_v25 = vld [vmem:[#allocation5 + $0x14] sm:$0xf0]  ;;  %v843_v28 = vor.u32 %v981_v20, %v842_v19 }
  0x46   : > { %520 = vmatpush.bf16.msra.mxu2 %v899_v58  ;;  %549 = vmatpush.bf16.msra.mxu3 %v903_v62  ;;  %v980_v26 = vld [vmem:[#allocation5 + $0xc] sm:$0xf]  ;;  %v852_v27 = vld [vmem:[#allocation5 + $0x18] sm:$0xf0]  ;;  %v847_v29 = vor.u32 %v979_v21, %v844_v23  ;;  %v851_v30 = vor.u32 %v982_v25, %v850_v24  ;;  %v975_v32 = vld [vmem:[%s1376_s30] sm:$0xff]  ;;  %s823_s18 = sshll.u32 %s1372_s22, 8 }
  0x47   : > { %v855_v31 = vor.u32 %v980_v26, %v852_v27  ;;  %v976_v33 = vld [vmem:[%s1376_s30 + $0x8] sm:$0xff]  ;;  %v977_v34 = vld [vmem:[%s1376_s30 + $0x10] sm:$0xff]  ;;  %v978_v35 = vld [vmem:[%s1376_s30 + $0x18] sm:$0xff]  ;;  %s1401_s23 = scalar_lea.vmem [#allocation8], %s823_s18  ;;  %s1012_s26 = sshll.u32 %s1297_s16, 8 }
  0x48   : > { %463 = vmatpush.bf16.msra.mxu0 %v875_v4  ;;  %v264_v36 = vld [vmem:[#allocation7] sm:$0xf]  ;;  %s715_s29 = scalar_lea.hbm %s1502_s3, %s1012_s26  ;;  %s716_s16 = sshll.u32 %s1401_s23, 4  ;;  %s717_s16 = int_to_ptr.vmem [resolvable:$true] %s716_s16 }
  0x49   : > { %492 = vmatpush.bf16.msra.mxu1 %v879_v5  ;;  %v1390_v37 = vperm.slane %v264_v36, 0  ;;  %v1392_v38 = vperm.slane %v264_v36, 1  ;;  %v1397_v45 = vperm.slane %v264_v36, 2  ;;  %v1399_v47 = vperm.slane %v264_v36, 3  ;;  %s718_s4 = sshll.u32 %s715_s29, 4  ;;  %s703_s5 = scalar_lea.sflag [#allocation4], %s1372_s22  ;;  %s719_s4 = int_to_ptr.hbm [resolvable:$true] %s718_s4 }
  0x4a   : > { %521 = vmatpush.bf16.msra.mxu2 %v883_v6  ;;  %550 = vmatpush.bf16.msra.mxu3 %v887_v10  ;;  %s1190_s7 = sshra.s32 %s719_s4, 4  ;;  %s1196_s11 = scalar_lea.hbm %s1502_s3, 512  ;;  %s1191_s7 = int_to_ptr.hbm [resolvable:$true] %s1190_s7 }
  0x4b   : > { %s1192_s8 = scalar_lea.hbm %s1191_s7, 256  ;;  %p1197_p11 = scmp.lt.s32.totalorder %s1191_s7, %s1502_s3 }
  0x4c   : > { %464 = vmatpush.bf16.msra.mxu0 %v859_v16  ;;  %p1193_p1 = scmp.ne.s32.totalorder %s1191_s7, %s1192_s8  ;;  %p1198_p2 = scmp.lt.s32.totalorder %s1196_s11, %s1192_s8 }
  0x4d   : > { %493 = vmatpush.bf16.msra.mxu1 %v863_v17 }
  0x4e   : > { %522 = vmatpush.bf16.msra.mxu2 %v867_v18  ;;  %551 = vmatpush.bf16.msra.mxu3 %v871_v22  ;;  %p1194_p4 = pnand %p1193_p1, %p1342_p3  ;;  %p1199_p9 = por %p1198_p2, %p1197_p11 }
  0x50   : > { %465 = vmatpush.bf16.msra.mxu0 %v843_v28  ;;  %p1195_p8 = pneg %p1194_p4 }
  0x51   : > { %494 = vmatpush.bf16.msra.mxu1 %v847_v29 }
  0x52   : > { %523 = vmatpush.bf16.msra.mxu2 %v851_v30  ;;  %552 = vmatpush.bf16.msra.mxu3 %v855_v31  ;;  %p1200_p10 = pnand %p1199_p9, %p1195_p8 }
  0x53   : > { %466 = vmatmul.bf16.vlgmr.msra.gmra.mxu0 %v975_v32 }
  0x54   : > { %495 = vmatmul.bf16.vlgmr.msra.gmra.mxu1 %v975_v32 }
  0x55   : > { %524 = vmatmul.bf16.vlgmr.msra.gmra.mxu2 %v975_v32  ;;  %553 = vmatmul.bf16.vlgmr.msra.gmra.mxu3 %v975_v32 }
  0x63   : > { %471 = vmatmul.bf16.gmra.mxu0 %v976_v33 }
  0x64   : > { %500 = vmatmul.bf16.gmra.mxu1 %v976_v33 }
  0x65   : > { %529 = vmatmul.bf16.gmra.mxu2 %v976_v33  ;;  %558 = vmatmul.bf16.gmra.mxu3 %v976_v33 }
  0x73   : > { %476 = vmatmul.bf16.gmra.mxu0 %v977_v34 }
  0x74   : > { %505 = vmatmul.bf16.gmra.mxu1 %v977_v34 }
  0x75   : > { %534 = vmatmul.bf16.gmra.mxu2 %v977_v34  ;;  %563 = vmatmul.bf16.gmra.mxu3 %v977_v34 }
  0x83   : > { %481 = vmatmul.bf16.gmra.mxu0 %v978_v35 }
  0x84   : > { %510 = vmatmul.bf16.gmra.mxu1 %v978_v35 }
  0x85   : > { %539 = vmatmul.bf16.gmra.mxu2 %v978_v35  ;;  %568 = vmatmul.bf16.gmra.mxu3 %v978_v35 }
  0xd0   : > { %v467_v39 = vpop.f32.mrf.mxu0 }
  0xd1   : > { %v468_v40 = vadd.f32 %v467_v39, %v1390_v37  ;;  %v496_v41 = vpop.f32.mrf.mxu1 }
  0xd2   : > { %v497_v42 = vadd.f32 %v496_v41, %v1392_v38 }
  0xd3   : > { %vm574_vm0 = vcmp.ge.f32.partialorder %v468_v40, 0.0  ;;  %v606_v43 = vmul.f32 0.2, %v468_v40 }
  0xd4   : > { %vm575_vm1 = vcmp.ge.f32.partialorder %v497_v42, 0.0  ;;  %v607_v44 = vmul.f32 0.2, %v497_v42 }
  0xd5   : > { %v638_v46 = vsel %vm574_vm0, %v468_v40, %v606_v43 }
  0xd6   : > { %670 = vst [vmem:[%s1401_s23] sm:$0xff] %v638_v46  ;;  %v639_v48 = vsel %vm575_vm1, %v497_v42, %v607_v44 }
  0xd7   : > { %671 = vst [vmem:[%s1401_s23 + $0x8] sm:$0xff] %v639_v48 }
  0xd8   : > { %v525_v49 = vpop.f32.mrf.mxu2  ;;  %v554_v51 = vpop.f32.mrf.mxu3 }
  0xd9   : > { %v526_v50 = vadd.f32 %v525_v49, %v1397_v45  ;;  %v469_v52 = vpop.f32.mrf.mxu0  ;;  %v555_v53 = vadd.f32 %v554_v51, %v1399_v47  ;;  %v498_v55 = vpop.f32.mrf.mxu1 }
  0xda   : > { %v470_v54 = vadd.f32 %v469_v52, %v1390_v37  ;;  %v499_v57 = vadd.f32 %v498_v55, %v1392_v38 }
  0xdb   : > { %vm576_vm2 = vcmp.ge.f32.partialorder %v526_v50, 0.0  ;;  %v608_v56 = vmul.f32 0.2, %v526_v50  ;;  %vm577_vm3 = vcmp.ge.f32.partialorder %v555_v53, 0.0  ;;  %v609_v58 = vmul.f32 0.2, %v555_v53 }
  0xdc   : > { %vm578_vm4 = vcmp.ge.f32.partialorder %v470_v54, 0.0  ;;  %v610_v59 = vmul.f32 0.2, %v470_v54  ;;  %vm579_vm5 = vcmp.ge.f32.partialorder %v499_v57, 0.0  ;;  %v611_v61 = vmul.f32 0.2, %v499_v57 }
  0xdd   : > { %v640_v60 = vsel %vm576_vm2, %v526_v50, %v608_v56  ;;  %v641_v62 = vsel %vm577_vm3, %v555_v53, %v609_v58 }
  0xde   : > { %672 = vst [vmem:[%s1401_s23 + $0x10] sm:$0xff] %v640_v60  ;;  %v642_v63 = vsel %vm578_vm4, %v470_v54, %v610_v59  ;;  %v643_v0 = vsel %vm579_vm5, %v499_v57, %v611_v61 }
  0xdf   : > { %673 = vst [vmem:[%s1401_s23 + $0x18] sm:$0xff] %v641_v62 }
  0xe0   : > { %674 = vst [vmem:[%s1401_s23 + $0x20] sm:$0xff] %v642_v63  ;;  %v527_v1 = vpop.f32.mrf.mxu2  ;;  %v556_v3 = vpop.f32.mrf.mxu3 }
  0xe1   : > { %675 = vst [vmem:[%s1401_s23 + $0x28] sm:$0xff] %v643_v0  ;;  %v528_v2 = vadd.f32 %v527_v1, %v1397_v45  ;;  %v472_v4 = vpop.f32.mrf.mxu0  ;;  %v557_v5 = vadd.f32 %v556_v3, %v1399_v47  ;;  %v501_v7 = vpop.f32.mrf.mxu1 }
  0xe2   : > { %v473_v6 = vadd.f32 %v472_v4, %v1390_v37  ;;  %v502_v9 = vadd.f32 %v501_v7, %v1392_v38 }
  0xe3   : > { %vm580_vm6 = vcmp.ge.f32.partialorder %v528_v2, 0.0  ;;  %v612_v8 = vmul.f32 0.2, %v528_v2  ;;  %vm581_vm7 = vcmp.ge.f32.partialorder %v557_v5, 0.0  ;;  %v613_v10 = vmul.f32 0.2, %v557_v5 }
  0xe4   : > { %vm582_vm8 = vcmp.ge.f32.partialorder %v473_v6, 0.0  ;;  %v614_v11 = vmul.f32 0.2, %v473_v6  ;;  %vm583_vm9 = vcmp.ge.f32.partialorder %v502_v9, 0.0  ;;  %v615_v13 = vmul.f32 0.2, %v502_v9 }
  0xe5   : > { %v644_v12 = vsel %vm580_vm6, %v528_v2, %v612_v8  ;;  %v645_v14 = vsel %vm581_vm7, %v557_v5, %v613_v10 }
  0xe6   : > { %676 = vst [vmem:[%s1401_s23 + $0x30] sm:$0xff] %v644_v12  ;;  %v646_v15 = vsel %vm582_vm8, %v473_v6, %v614_v11  ;;  %v647_v16 = vsel %vm583_vm9, %v502_v9, %v615_v13 }
  0xe7   : > { %677 = vst [vmem:[%s1401_s23 + $0x38] sm:$0xff] %v645_v14 }
  0xe8   : > { %678 = vst [vmem:[%s1401_s23 + $0x40] sm:$0xff] %v646_v15  ;;  %v530_v17 = vpop.f32.mrf.mxu2  ;;  %v559_v19 = vpop.f32.mrf.mxu3 }
  0xe9   : > { %679 = vst [vmem:[%s1401_s23 + $0x48] sm:$0xff] %v647_v16  ;;  %v531_v18 = vadd.f32 %v530_v17, %v1397_v45  ;;  %v474_v20 = vpop.f32.mrf.mxu0  ;;  %v560_v21 = vadd.f32 %v559_v19, %v1399_v47  ;;  %v503_v23 = vpop.f32.mrf.mxu1 }
  0xea   : > { %v475_v22 = vadd.f32 %v474_v20, %v1390_v37  ;;  %v504_v25 = vadd.f32 %v503_v23, %v1392_v38 }
  0xeb   : > { %vm584_vm10 = vcmp.ge.f32.partialorder %v531_v18, 0.0  ;;  %v616_v24 = vmul.f32 0.2, %v531_v18  ;;  %vm585_vm11 = vcmp.ge.f32.partialorder %v560_v21, 0.0  ;;  %v617_v26 = vmul.f32 0.2, %v560_v21 }
  0xec   : > { %vm586_vm12 = vcmp.ge.f32.partialorder %v475_v22, 0.0  ;;  %v618_v27 = vmul.f32 0.2, %v475_v22  ;;  %vm587_vm13 = vcmp.ge.f32.partialorder %v504_v25, 0.0  ;;  %v619_v29 = vmul.f32 0.2, %v504_v25 }
  0xed   : > { %v648_v28 = vsel %vm584_vm10, %v531_v18, %v616_v24  ;;  %v649_v30 = vsel %vm585_vm11, %v560_v21, %v617_v26 }
  0xee   : > { %680 = vst [vmem:[%s1401_s23 + $0x50] sm:$0xff] %v648_v28  ;;  %v650_v31 = vsel %vm586_vm12, %v475_v22, %v618_v27  ;;  %v651_v32 = vsel %vm587_vm13, %v504_v25, %v619_v29 }
  0xef   : > { %681 = vst [vmem:[%s1401_s23 + $0x58] sm:$0xff] %v649_v30 }
  0xf0   : > { %682 = vst [vmem:[%s1401_s23 + $0x60] sm:$0xff] %v650_v31  ;;  %v532_v33 = vpop.f32.mrf.mxu2  ;;  %v561_v35 = vpop.f32.mrf.mxu3 }
  0xf1   : > { %683 = vst [vmem:[%s1401_s23 + $0x68] sm:$0xff] %v651_v32  ;;  %v533_v34 = vadd.f32 %v532_v33, %v1397_v45  ;;  %v477_v36 = vpop.f32.mrf.mxu0  ;;  %v562_v39 = vadd.f32 %v561_v35, %v1399_v47  ;;  %v506_v41 = vpop.f32.mrf.mxu1 }
  0xf2   : > { %v478_v40 = vadd.f32 %v477_v36, %v1390_v37  ;;  %v507_v43 = vadd.f32 %v506_v41, %v1392_v38 }
  0xf3   : > { %vm588_vm14 = vcmp.ge.f32.partialorder %v533_v34, 0.0  ;;  %v620_v42 = vmul.f32 0.2, %v533_v34  ;;  %vm589_vm15 = vcmp.ge.f32.partialorder %v562_v39, 0.0  ;;  %v621_v44 = vmul.f32 0.2, %v562_v39 }
  0xf4   : > { %vm590_vm0 = vcmp.ge.f32.partialorder %v478_v40, 0.0  ;;  %v622_v46 = vmul.f32 0.2, %v478_v40  ;;  %vm591_vm1 = vcmp.ge.f32.partialorder %v507_v43, 0.0  ;;  %v623_v49 = vmul.f32 0.2, %v507_v43 }
  0xf5   : > { %v652_v48 = vsel %vm588_vm14, %v533_v34, %v620_v42  ;;  %v653_v50 = vsel %vm589_vm15, %v562_v39, %v621_v44 }
  0xf6   : > { %684 = vst [vmem:[%s1401_s23 + $0x70] sm:$0xff] %v652_v48  ;;  %v654_v51 = vsel %vm590_vm0, %v478_v40, %v622_v46  ;;  %v655_v52 = vsel %vm591_vm1, %v507_v43, %v623_v49 }
  0xf7   : > { %685 = vst [vmem:[%s1401_s23 + $0x78] sm:$0xff] %v653_v50 }
  0xf8   : > { %686 = vst [vmem:[%s1401_s23 + $0x80] sm:$0xff] %v654_v51  ;;  %v535_v53 = vpop.f32.mrf.mxu2  ;;  %v564_v55 = vpop.f32.mrf.mxu3 }
  0xf9   : > { %687 = vst [vmem:[%s1401_s23 + $0x88] sm:$0xff] %v655_v52  ;;  %v536_v54 = vadd.f32 %v535_v53, %v1397_v45  ;;  %v479_v56 = vpop.f32.mrf.mxu0  ;;  %v565_v57 = vadd.f32 %v564_v55, %v1399_v47  ;;  %v508_v59 = vpop.f32.mrf.mxu1 }
  0xfa   : > { %v480_v58 = vadd.f32 %v479_v56, %v1390_v37  ;;  %v509_v61 = vadd.f32 %v508_v59, %v1392_v38 }
  0xfb   : > { %vm592_vm2 = vcmp.ge.f32.partialorder %v536_v54, 0.0  ;;  %v624_v60 = vmul.f32 0.2, %v536_v54  ;;  %vm593_vm3 = vcmp.ge.f32.partialorder %v565_v57, 0.0  ;;  %v625_v62 = vmul.f32 0.2, %v565_v57 }
  0xfc   : > { %vm594_vm4 = vcmp.ge.f32.partialorder %v480_v58, 0.0  ;;  %v626_v63 = vmul.f32 0.2, %v480_v58  ;;  %vm595_vm5 = vcmp.ge.f32.partialorder %v509_v61, 0.0  ;;  %v627_v1 = vmul.f32 0.2, %v509_v61 }
  0xfd   : > { %v656_v0 = vsel %vm592_vm2, %v536_v54, %v624_v60  ;;  %v657_v2 = vsel %vm593_vm3, %v565_v57, %v625_v62 }
  0xfe   : > { %688 = vst [vmem:[%s1401_s23 + $0x90] sm:$0xff] %v656_v0  ;;  %v658_v3 = vsel %vm594_vm4, %v480_v58, %v626_v63  ;;  %v659_v4 = vsel %vm595_vm5, %v509_v61, %v627_v1 }
  0xff   : > { %689 = vst [vmem:[%s1401_s23 + $0x98] sm:$0xff] %v657_v2 }
 0x100   : > { %690 = vst [vmem:[%s1401_s23 + $0xa0] sm:$0xff] %v658_v3  ;;  %v537_v5 = vpop.f32.mrf.mxu2  ;;  %v566_v7 = vpop.f32.mrf.mxu3 }
 0x101   : > { %691 = vst [vmem:[%s1401_s23 + $0xa8] sm:$0xff] %v659_v4  ;;  %v538_v6 = vadd.f32 %v537_v5, %v1397_v45  ;;  %v482_v8 = vpop.f32.mrf.mxu0  ;;  %v567_v9 = vadd.f32 %v566_v7, %v1399_v47  ;;  %v511_v11 = vpop.f32.mrf.mxu1 }
 0x102   : > { %v483_v10 = vadd.f32 %v482_v8, %v1390_v37  ;;  %v512_v13 = vadd.f32 %v511_v11, %v1392_v38 }
 0x103   : > { %vm596_vm6 = vcmp.ge.f32.partialorder %v538_v6, 0.0  ;;  %v628_v12 = vmul.f32 0.2, %v538_v6  ;;  %vm597_vm7 = vcmp.ge.f32.partialorder %v567_v9, 0.0  ;;  %v629_v14 = vmul.f32 0.2, %v567_v9 }
 0x104   : > { %vm598_vm8 = vcmp.ge.f32.partialorder %v483_v10, 0.0  ;;  %v630_v15 = vmul.f32 0.2, %v483_v10  ;;  %vm599_vm9 = vcmp.ge.f32.partialorder %v512_v13, 0.0  ;;  %v631_v17 = vmul.f32 0.2, %v512_v13 }
 0x105   : > { %v660_v16 = vsel %vm596_vm6, %v538_v6, %v628_v12  ;;  %v661_v18 = vsel %vm597_vm7, %v567_v9, %v629_v14 }
 0x106   : > { %692 = vst [vmem:[%s1401_s23 + $0xb0] sm:$0xff] %v660_v16  ;;  %v662_v19 = vsel %vm598_vm8, %v483_v10, %v630_v15  ;;  %v663_v20 = vsel %vm599_vm9, %v512_v13, %v631_v17 }
 0x107   : > { %693 = vst [vmem:[%s1401_s23 + $0xb8] sm:$0xff] %v661_v18 }
 0x108   : > { %694 = vst [vmem:[%s1401_s23 + $0xc0] sm:$0xff] %v662_v19  ;;  %v540_v21 = vpop.f32.mrf.mxu2  ;;  %v569_v23 = vpop.f32.mrf.mxu3 }
 0x109   : > { %695 = vst [vmem:[%s1401_s23 + $0xc8] sm:$0xff] %v663_v20  ;;  %v541_v22 = vadd.f32 %v540_v21, %v1397_v45  ;;  %v484_v24 = vpop.f32.mrf.mxu0  ;;  %v570_v25 = vadd.f32 %v569_v23, %v1399_v47  ;;  %v513_v27 = vpop.f32.mrf.mxu1 }
 0x10a   : > { %v485_v26 = vadd.f32 %v484_v24, %v1390_v37  ;;  %v514_v29 = vadd.f32 %v513_v27, %v1392_v38 }
 0x10b   : > { %vm600_vm10 = vcmp.ge.f32.partialorder %v541_v22, 0.0  ;;  %v632_v28 = vmul.f32 0.2, %v541_v22  ;;  %vm601_vm11 = vcmp.ge.f32.partialorder %v570_v25, 0.0  ;;  %v633_v30 = vmul.f32 0.2, %v570_v25 }
 0x10c   : > { %vm602_vm12 = vcmp.ge.f32.partialorder %v485_v26, 0.0  ;;  %v634_v31 = vmul.f32 0.2, %v485_v26  ;;  %vm603_vm13 = vcmp.ge.f32.partialorder %v514_v29, 0.0  ;;  %v635_v33 = vmul.f32 0.2, %v514_v29 }
 0x10d   : > { %v664_v32 = vsel %vm600_vm10, %v541_v22, %v632_v28  ;;  %v665_v34 = vsel %vm601_vm11, %v570_v25, %v633_v30 }
 0x10e   : > { %696 = vst [vmem:[%s1401_s23 + $0xd0] sm:$0xff] %v664_v32  ;;  %v666_v37 = vsel %vm602_vm12, %v485_v26, %v634_v31  ;;  %v667_v35 = vsel %vm603_vm13, %v514_v29, %v635_v33 }
 0x10f   : > { %697 = vst [vmem:[%s1401_s23 + $0xd8] sm:$0xff] %v665_v34 }
 0x110   : > { %698 = vst [vmem:[%s1401_s23 + $0xe0] sm:$0xff] %v666_v37  ;;  %v542_v38 = vpop.f32.mrf.mxu2  ;;  %v571_v39 = vpop.f32.mrf.mxu3 }
 0x111   : > { %699 = vst [vmem:[%s1401_s23 + $0xe8] sm:$0xff] %v667_v35  ;;  %v543_v36 = vadd.f32 %v542_v38, %v1397_v45  ;;  %v572_v40 = vadd.f32 %v571_v39, %v1399_v47 }
 0x113   : > { %vm604_vm14 = vcmp.ge.f32.partialorder %v543_v36, 0.0  ;;  %v636_v41 = vmul.f32 0.2, %v543_v36  ;;  %vm605_vm15 = vcmp.ge.f32.partialorder %v572_v40, 0.0  ;;  %v637_v42 = vmul.f32 0.2, %v572_v40 }
 0x115   : > { %v668_v43 = vsel %vm604_vm14, %v543_v36, %v636_v41  ;;  %v669_v44 = vsel %vm605_vm15, %v572_v40, %v637_v42 }
 0x116   : > { %700 = vst [vmem:[%s1401_s23 + $0xf0] sm:$0xff] %v668_v43 }
 0x117   : > { %701 = vst [vmem:[%s1401_s23 + $0xf8] sm:$0xff] %v669_v44 }
 0x118   : > { %1203 = shalt.err (!%p1200_p10)
}
 0x119   : > { %s1254_s22 = smov 512   ;;  %s1255_s25 = smov 32  }
 0x11a   : > { %1023 = dma.vmem_to_hbm [thread:$0]  (%p1342_p3), %s717_s16, 4096, %s719_s4, %s703_s5, %s1254_s22, %s1254_s22, %s1255_s25  }
 0x11b PF: > { %s733_s30 = sand.u32 1, %s1234_s12   ;;  %p1508_p12 = scmp.ge.s32.totalorder %s1246_s15, 2 }
 0x11c   : > { %s734_s18 = scalar_lea.sflag [#allocation4], %s733_s30 }
 0x11d   : > { %p1037_p13 = pnand %p1508_p12, %p1311_p6 }
 0x11f   : > { %p1038_p0 = pneg %p1037_p13 }
 0x121   : > { %1229 = dma.done.wait (%p1038_p0), %s734_s18, 4096  }
 0x122   : > { %1231 = vsyncadd (%p1038_p0), %s734_s18, 4294963200  ;;  %p17_p5 = scmp.ge.s32.totalorder %s1332_s6, 4   ;;  %s1509_s12 = smov %s1238_s13 }
 0x123   : > { %s1510_s13 = smov %s1242_s14  ;;  %s1511_s14 = smov %s1348_s10 }
 0x124   : > { %s1512_s15 = smov %s1332_s6  ;;  %19 = sbr.rel (!%p17_p5) target bundleno = 6 (0x6), region = 85 }
 0x129   :  { %740 = vsyncpa [#allocation3], 1 }
 0x12a   :  { %742 = vsyncpa [#allocation3 + $0x1], 1 }
 0x12b   :  { %743 = vsyncpa [#allocation6], 1 }
 0x12c   :  { %744 = vsyncpa [#allocation4], 1 }
 0x12d   :  { %746 = vsyncpa [#allocation4 + $0x1], 1 }

</bundles_post_ra>
